<compile_context>
chip_gen: v5e
topology: v5e:2x2
jax: 0.10.0
libtpu: 0.0.40
codegen_flags: <defaults>
</compile_context>

<pallas_src>
import math

import numpy as np
import jax
import jax.numpy as jnp
from jax.experimental import pallas as pl
from jax.experimental.pallas import tpu as pltpu


def _round_up(x, m):
    return ((x + m - 1) // m) * m


# ---------------------------------------------------------------------------
# Kernel 1: node projection + per-node source attention score
# ---------------------------------------------------------------------------
def _project_kernel(h_ref, w_ref, a_src_ref, z_ref, s_ref):
    # z = h @ W  (bf16 MXU operands, f32 accumulation)
    z = jnp.dot(h_ref[...], w_ref[...], preferred_element_type=jnp.float32)
    # Source-side score s[n] = z[n] . a_src  (f32; tiny matmul)
    s_ref[...] = jnp.dot(z, a_src_ref[...], preferred_element_type=jnp.float32)
    z_ref[...] = z.astype(jnp.bfloat16)


# ---------------------------------------------------------------------------
# Kernel 2: masked-softmax aggregation, reduced to a single bf16 matmul per step
#   grid = (dst tiles [parallel], src tiles [arbitrary / reduction])
# ---------------------------------------------------------------------------
def _aggregate_kernel(adj_ref, zw_ref, out_ref):
    j = pl.program_id(1)

    @pl.when(j == 0)
    def _init():
        out_ref[...] = jnp.zeros_like(out_ref)

    # adjacency values are {0, 1}; cast once, then one MXU matmul accumulates
    # numerator columns and the denominator column simultaneously.
    p = adj_ref[...].astype(jnp.bfloat16)                        # [TD, TS]
    out_ref[...] += jnp.dot(p, zw_ref[...],
                            preferred_element_type=jnp.float32)  # [TD, out_pad]

    @pl.when(j == pl.num_programs(1) - 1)
    def _finalize():
        acc = out_ref[...]
        denom = acc[:, -1:]                                      # folded-in sum of w
        inv = pl.reciprocal(jnp.where(denom > 0.0, denom, 1.0), approx=True)
        # Zero in-degree rows (incl. padding) have denom == 0 -> zeros out.
        out_ref[...] = acc * inv


# ---------------------------------------------------------------------------
# Wrapper
# ---------------------------------------------------------------------------
def rcd_graph_layer(h, fc_weight, attn_weight, adj, *, tile_dst=512, tile_src=1024):
    """
    h           : [N, in_dim]        node features
    fc_weight   : [out_dim, in_dim]  (PyTorch nn.Linear weight layout)
    attn_weight : [1, 2*out_dim]     (PyTorch nn.Linear weight layout)
    adj         : [N, N], adj[dst, src] != 0 iff edge src -> dst
                  (bool or {0,1} int8 preferred -- avoids an extra O(N^2) cast)
    """
    N, in_dim = h.shape
    out_dim = fc_weight.shape[0]
    f32, bf16 = jnp.float32, jnp.bfloat16

    n128 = _round_up(N, 128)
    td = min(tile_dst, n128)
    ts = min(tile_src, n128)
    n_pad = _round_up(n128, math.lcm(td, ts))   # defaults: ts % td == 0 -> lcm == ts
    in_pad = _round_up(in_dim, 128)
    # Reserve one extra (zero-weight) output column to carry the softmax denom.
    out_pad = _round_up(out_dim + 1, 128)

    # Lane-dense padded operands (zeros are inert: zero weight rows/cols, adj=0).
    h_p = jnp.zeros((n_pad, in_pad), bf16).at[:N, :in_dim].set(h.astype(bf16))
    w_p = jnp.zeros((in_pad, out_pad), bf16).at[:in_dim, :out_dim].set(
        fc_weight.astype(bf16).T)
    a_src_p = jnp.zeros((out_pad, 1), f32).at[:out_dim, 0].set(
        attn_weight[0, :out_dim].astype(f32))

    # Adjacency: take bool / {0,1} int8 as-is; otherwise normalize once.
    if adj.dtype == jnp.bool_ or adj.dtype == jnp.int8:
        adj_i8 = adj.astype(jnp.int8)
    else:
        adj_i8 = (adj != 0).astype(jnp.int8)
    adj_p = jnp.pad(adj_i8, ((0, n_pad - N), (0, n_pad - N)))

    # --- Kernel 1: projection + source scores --------------------------------
    z, s = pl.pallas_call(
        _project_kernel,
        out_shape=(jax.ShapeDtypeStruct((n_pad, out_pad), bf16),
                   jax.ShapeDtypeStruct((n_pad, 1), f32)),
        grid_spec=pltpu.PrefetchScalarGridSpec(
            num_scalar_prefetch=0,
            grid=(n_pad // td,),
            in_specs=[
                pl.BlockSpec((td, in_pad), lambda i: (i, 0)),        # h tile
                pl.BlockSpec((in_pad, out_pad), lambda i: (0, 0)),   # W (resident)
                pl.BlockSpec((out_pad, 1), lambda i: (0, 0)),        # a_src column
            ],
            out_specs=[
                pl.BlockSpec((td, out_pad), lambda i: (i, 0)),       # z (bf16)
                pl.BlockSpec((td, 1), lambda i: (i, 0)),             # s (f32)
            ],
        ),
        compiler_params=pltpu.CompilerParams(
            dimension_semantics=("parallel",)),
    )(h_p, w_p, a_src_p)

    # --- O(N*out_pad) glue: fold softmax weights + denominator into messages --
    s = s[:, 0]
    g = jnp.max(s[:N])                          # global stabilizer (cancels exactly)
    wgt = jnp.exp(s - g)                        # [n_pad] f32, real entries in (0, 1]
    zw = ((z.astype(f32) * wgt[:, None])
          .at[:, out_pad - 1].set(wgt)          # denominator column
          .astype(bf16))

    # --- Kernel 2: tiled aggregation ------------------------------------------
    out_p = pl.pallas_call(
        _aggregate_kernel,
        out_shape=jax.ShapeDtypeStruct((n_pad, out_pad), f32),
        grid_spec=pltpu.PrefetchScalarGridSpec(
            num_scalar_prefetch=0,
            grid=(n_pad // td, n_pad // ts),
            in_specs=[
                pl.BlockSpec((td, ts), lambda i, j: (i, j)),         # adj (int8)
                pl.BlockSpec((ts, out_pad), lambda i, j: (j, 0)),    # zw src tile
            ],
            out_specs=pl.BlockSpec((td, out_pad), lambda i, j: (i, 0)),
        ),
        compiler_params=pltpu.CompilerParams(
            dimension_semantics=("parallel", "arbitrary")),
    )(adj_p, zw)

    return out_p[:N, :out_dim]


# ---------------------------------------------------------------------------
# Pure-JAX reference (f32, full e = z.a_src + z.a_dst formula) for correctness
# ---------------------------------------------------------------------------
def rcd_graph_layer_ref(h, fc_weight, attn_weight, adj):
    out_dim = fc_weight.shape[0]
    z = h @ fc_weight.T
    a_src = attn_weight[0, :out_dim]
    a_dst = attn_weight[0, out_dim:]
    e = (z @ a_dst)[:, None] + (z @ a_src)[None, :]        # [dst, src]
    mask = adj > 0
    e = jnp.where(mask, e, -1e30)
    m = jnp.max(e, axis=1, keepdims=True)
    p = jnp.where(mask, jnp.exp(e - m), 0.0)
    denom = jnp.sum(p, axis=1, keepdims=True)
    alpha = p / jnp.where(denom > 0, denom, 1.0)
    return alpha @ z


if __name__ == "__main__":
    key = jax.random.PRNGKey(0)
    k_h, k_fc, k_attn, k_adj = jax.random.split(key, 4)

    # Deliberately non-aligned sizes exercise the padding path; 128x128 tiles
    # give a 2x2 aggregation grid so the reduction/finalize path is exercised.
    N, in_dim, out_dim = 200, 48, 40

    h = jax.random.normal(k_h, (N, in_dim), dtype=jnp.float32)
    fc_weight = jax.random.normal(k_fc, (out_dim, in_dim), dtype=jnp.float32) * 0.1
    attn_weight = jax.random.normal(k_attn, (1, 2 * out_dim), dtype=jnp.float32) * 0.1

    # Random directed graph as {0,1} int8; self-loops guarantee in-degree >= 1.
    adj = ((jax.random.uniform(k_adj, (N, N)) < 0.1)
           | jnp.eye(N, dtype=bool)).astype(jnp.int8)

    out = rcd_graph_layer(h, fc_weight, attn_weight, adj,
                          tile_dst=128, tile_src=128)
    out = jax.block_until_ready(out)

    ref = rcd_graph_layer_ref(h, fc_weight, attn_weight, adj)
    # bf16 MXU operands (f32 accumulation) + approx reciprocal -> relaxed tol.
    np.testing.assert_allclose(np.asarray(out), np.asarray(ref),
                               rtol=2e-2, atol=2e-2)

    print("KERNEL_OK")
</pallas_src>

<mosaic_0001>
module attributes {stable_mosaic.version = 11 : i64} {
  func.func @_project_kernel(%arg0: i32, %arg1: memref<128x128xbf16, #tpu.memory_space<vmem>>, %arg2: memref<128x128xbf16, #tpu.memory_space<vmem>>, %arg3: memref<128x1xf32, #tpu.memory_space<vmem>>, %arg4: memref<128x128xbf16, #tpu.memory_space<vmem>>, %arg5: memref<128x1xf32, #tpu.memory_space<vmem>>) attributes {dimension_semantics = [#tpu.dimension_semantics<parallel>], iteration_bounds = array<i64: 2>, scalar_prefetch = 0 : i64, scratch_operands = 0 : i64, tpu.core_type = #tpu.core_type<tc>, window_params = [{transform_indices = @transform_0, window_bounds = array<i64: 128, 128>}, {pipeline_mode = #tpu.pipeline_mode<synchronous>, transform_indices = @transform_1, window_bounds = array<i64: 128, 128>}, {pipeline_mode = #tpu.pipeline_mode<synchronous>, transform_indices = @transform_2, window_bounds = array<i64: 128, 1>}, {transform_indices = @transform_3, window_bounds = array<i64: 128, 128>}, {transform_indices = @transform_4, window_bounds = array<i64: 128, 1>}]} {
    %c0 = arith.constant 0 : index
    %c0_0 = arith.constant 0 : index
    %0 = vector.load %arg1[%c0, %c0_0] : memref<128x128xbf16, #tpu.memory_space<vmem>>, vector<128x128xbf16>
    %c0_1 = arith.constant 0 : index
    %c0_2 = arith.constant 0 : index
    %1 = vector.load %arg2[%c0_1, %c0_2] : memref<128x128xbf16, #tpu.memory_space<vmem>>, vector<128x128xbf16>
    %cst = arith.constant dense<0.000000e+00> : vector<128x128xf32>
    %2 = tpu.matmul %0, %1, %cst {dimension_numbers = #tpu.dot_dimension_numbers<[1], [0], [0], [1], [0, 0, 1, 1], [], []>} : vector<128x128xbf16>, vector<128x128xbf16>, vector<128x128xf32> -> vector<128x128xf32>
    %c0_3 = arith.constant 0 : index
    %c0_4 = arith.constant 0 : index
    %3 = vector.load %arg3[%c0_3, %c0_4] : memref<128x1xf32, #tpu.memory_space<vmem>>, vector<128x1xf32>
    %cst_5 = arith.constant dense<0.000000e+00> : vector<128x1xf32>
    %4 = tpu.matmul %2, %3, %cst_5 {dimension_numbers = #tpu.dot_dimension_numbers<[1], [0], [0], [1], [0, 0, 1, 1], [], []>} : vector<128x128xf32>, vector<128x1xf32>, vector<128x1xf32> -> vector<128x1xf32>
    %c0_6 = arith.constant 0 : index
    %c0_7 = arith.constant 0 : index
    %5 = vector.load %arg5[%c0_6, %c0_7] : memref<128x1xf32, #tpu.memory_space<vmem>>, vector<128x1xf32>
    tpu.vector_store %arg5[%c0_6, %c0_7], %4 {strides = array<i32>} : memref<128x1xf32, #tpu.memory_space<vmem>>, vector<128x1xf32>,
    %6 = arith.truncf %2 : vector<128x128xf32> to vector<128x128xbf16>
    %c0_8 = arith.constant 0 : index
    %c0_9 = arith.constant 0 : index
    %7 = vector.load %arg4[%c0_8, %c0_9] : memref<128x128xbf16, #tpu.memory_space<vmem>>, vector<128x128xbf16>
    tpu.vector_store %arg4[%c0_8, %c0_9], %6 {strides = array<i32>} : memref<128x128xbf16, #tpu.memory_space<vmem>>, vector<128x128xbf16>,
    return
  }
  func.func @transform_0(%arg0: i32) -> (i32, i32) {
    %c0_i32 = arith.constant 0 : i32
    %c0_i32_0 = arith.constant 0 : i32
    return %arg0, %c0_i32 : i32, i32
  }
  func.func @transform_1(%arg0: i32) -> (i32, i32) {
    %c0_i32 = arith.constant 0 : i32
    %c0_i32_0 = arith.constant 0 : i32
    %c0_i32_1 = arith.constant 0 : i32
    return %c0_i32, %c0_i32_0 : i32, i32
  }
  func.func @transform_2(%arg0: i32) -> (i32, i32) {
    %c0_i32 = arith.constant 0 : i32
    %c0_i32_0 = arith.constant 0 : i32
    %c0_i32_1 = arith.constant 0 : i32
    return %c0_i32, %c0_i32_0 : i32, i32
  }
  func.func @transform_3(%arg0: i32) -> (i32, i32) {
    %c0_i32 = arith.constant 0 : i32
    %c0_i32_0 = arith.constant 0 : i32
    return %arg0, %c0_i32 : i32, i32
  }
  func.func @transform_4(%arg0: i32) -> (i32, i32) {
    %c0_i32 = arith.constant 0 : i32
    %c0_i32_0 = arith.constant 0 : i32
    return %arg0, %c0_i32 : i32, i32
  }
}

</mosaic_0001>

<bundles_post_ra>
// kernel: tpu_custom_call.1
= control target key start
LH: loop header
LB: loop body
LE: loop exit
PB: predicated region body
PF: predicated region fallthrough
CT: control target
= control target key end

     0   :  { %10 = vsyncpa [#allocation3], 0  ;;  %s1219_s0 = inlined_call_operand.vmem [shape: bf16[256,128], index: 0, kind: input, shape index: {}]   ;;  %s1220_s1 = inlined_call_operand.hbm [shape: bf16[128,128], index: 1, kind: input, shape index: {}]   ;;  %s1221_s2 = inlined_call_operand.vmem [shape: f32[128,1], index: 2, kind: input, shape index: {}]   ;;  %s1222_s3 = inlined_call_operand.hbm [shape: bf16[256,128], index: 3, kind: output, shape index: {0}]   ;;  %s1223_s4 = inlined_call_operand.vmem [shape: f32[256,1], index: 4, kind: output, shape index: {1}]  }
   0x1   :  { %11 = vsyncpa [#allocation4], 0 }
   0x2   :  { %13 = vsyncpa [#allocation4 + $0x1], 0  ;;  %s1011_s15 = smov 0   ;;  %s1013_s16 = smov 0  }
   0x3   :  { %s1015_s17 = smov 0   ;;  %s1017_s18 = smov 0  }
   0x4 LB: > { %s1032_s19 = sadd.s32 4294967295, %s979_s18   ;;  %s661_s20 = sadd.s32 4294967294, %s979_s18   ;;  %s979_s18 = sphi %s1017_s18, %s1229_s18   ;;  %s975_s17 = sphi %s1015_s17, %s1228_s17   ;;  %s971_s16 = sphi %s1013_s16, %s1227_s16   ;;  %s967_s15 = sphi %s1011_s15, %s1226_s15  }
   0x5   : > { %s1036_s21 = sadd.s32 1, %s979_s18   ;;  %s94_s22 = sadd.s32 1, %s975_s17 }
   0x6   : > { %s91_s23 = ssub.s32 %s979_s18, %s1036_s21  ;;  %p104_p0 = scmp.ne.s32.totalorder %s975_s17, %s971_s16 }
   0x7   : > { %p92_p1 = scmp.eq.s32.totalorder %s91_s23, 0  ;;  %p105_p2 = scmp.eq.s32.totalorder %s1032_s19, 1 }
   0x8   : > { %p110_p3 = scmp.ne.s32.totalorder %s971_s16, %s967_s15  ;;  %p111_p4 = scmp.eq.s32.totalorder %s661_s20, 1 }
   0x9   : > { %s1047_s24 = scalar_select %p92_p1, %s975_s17, %s94_s22  }
   0xa   : > { %p1049_p5 = por %p105_p2, %p104_p0  ;;  %p1053_p6 = por %p111_p4, %p110_p3 }
   0xb   : > { %p662_p7 = scmp.ge.s32.totalorder %s979_s18, 1  ;;  %p144_p8 = scmp.lt.s32.totalorder %s979_s18, 3 }
   0xc   : > { %p843_p9 = scmp.eq.s32.totalorder %s1032_s19, 0  ;;  %s155_s29 = sshll.u32 %s1220_s1, 4  ;;  %s156_s29 = int_to_ptr.hbm [resolvable:$true] %s155_s29 }
   0xd   : > { %p145_p10 = pnand %p662_p7, %p144_p8  ;;  %s981_s30 = smov [#allocation2]  }
   0xe   : > { %s157_s5 = sshll.u32 %s981_s30, 4  ;;  %s982_s6 = smov 64   ;;  %s158_s5 = int_to_ptr.vmem [resolvable:$true] %s157_s5 }
   0xf   : > { %p835_p11 = pneg %p145_p10  ;;  %s983_s7 = smov 4  }
  0x10   : > { %185 = sbr.rel (%p145_p10) target bundleno = 375 (0x177), region = 32 }
  0x11   : > { %p836_p12 = pnand %p843_p9, %p835_p11 }
  0x13   : > { %838 = dma.hbm_to_vmem [thread:$0]  (!%p836_p12), %s156_s29, 1024, %s158_s5, [#allocation3], %s982_s6, %s982_s6, %s983_s7  }
  0x15   : > { %958 = dma.done.wait (%p843_p9), [#allocation3], 1024  }
  0x16   : > { %960 = vsyncadd (%p843_p9), [#allocation3], 4294966272  ;;  %v756_v0 = vld [vmem:[#allocation2 + $0x38] sm:$0xff]  ;;  %v755_v1 = vld [vmem:[#allocation2 + $0x30] sm:$0xff]  ;;  %s668_s8 = sshll.u32 %s1032_s19, 4  ;;  %s207_s20 = sand.u32 1, %s971_s16  }
  0x17   : > { %805 = vmatpush.bf16.msra.mxu2 %v756_v0  ;;  %358 = vmatpush.bf16.msra.mxu0 %v756_v0  ;;  %v754_v2 = vld [vmem:[#allocation2 + $0x28] sm:$0xff]  ;;  %v753_v3 = vld [vmem:[#allocation2 + $0x20] sm:$0xff]  ;;  %v752_v4 = vld [vmem:[#allocation2 + $0x18] sm:$0xff]  ;;  %p218_p13 = scmp.lt.s32.totalorder %s668_s8, 31  ;;  %s667_s22 = sshll.u32 %s207_s20, 6 }
  0x18   : > { %v751_v5 = vld [vmem:[#allocation2 + $0x10] sm:$0xff]  ;;  %v750_v6 = vld [vmem:[#allocation2 + $0x8] sm:$0xff]  ;;  %v749_v7 = vld [vmem:[#allocation2] sm:$0xff]  ;;  %s757_s27 = sshll.u32 %s1032_s19, 6  ;;  %s538_s6 = scalar_lea.sflag [#allocation4], %s207_s20 }
  0x19   : > { %s1231_s8 = smov (!%p218_p13, %s668_s8), 31  ;;  %v422_v12 = vld [vmem:[%s1221_s2 + $0x78] sm:$0xff]  ;;  %v421_v13 = vld [vmem:[%s1221_s2 + $0x70] sm:$0xff]  ;;  %v420_v14 = vld [vmem:[%s1221_s2 + $0x68] sm:$0xff]  ;;  %s554_s30 = scalar_lea.hbm %s1222_s3, %s757_s27 }
  0x1a   : > { %s669_s9 = sshll.u32 %s1231_s8, 2  ;;  %423 = vmatpush.msra.mxu1 %v422_v12  ;;  %813 = vmatpush.msra.mxu3 %v422_v12  ;;  %v419_v15 = vld [vmem:[%s1221_s2 + $0x60] sm:$0xff]  ;;  %v418_v16 = vld [vmem:[%s1221_s2 + $0x58] sm:$0xff]  ;;  %v417_v17 = vld [vmem:[%s1221_s2 + $0x50] sm:$0xff]  ;;  %s557_s5 = sshll.u32 %s554_s30, 4  ;;  %s558_s5 = int_to_ptr.hbm [resolvable:$true] %s557_s5 }
  0x1b   : > { %806 = vmatpush.bf16.msra.mxu2 %v755_v1  ;;  %359 = vmatpush.bf16.msra.mxu0 %v755_v1  ;;  %s1076_s12 = scalar_lea.vmem %s1219_s0, %s669_s9  ;;  %v416_v18 = vld [vmem:[%s1221_s2 + $0x48] sm:$0xff]  ;;  %v415_v21 = vld [vmem:[%s1221_s2 + $0x40] sm:$0xff]  ;;  %v414_v22 = vld [vmem:[%s1221_s2 + $0x38] sm:$0xff]  ;;  %s927_s7 = sshra.s32 %s558_s5, 4  ;;  %s928_s7 = int_to_ptr.hbm [resolvable:$true] %s927_s7 }
  0x1c   : > { %v745_v8 = vld [vmem:[%s1076_s12 + $0x20] sm:$0xff]  ;;  %v746_v10 = vld [vmem:[%s1076_s12 + $0x28] sm:$0xff]  ;;  %424 = vmatpush.msra.mxu1 %v421_v13  ;;  %814 = vmatpush.msra.mxu3 %v421_v13  ;;  %v747_v19 = vld [vmem:[%s1076_s12 + $0x30] sm:$0xff]  ;;  %s929_s9 = scalar_lea.hbm %s928_s7, 64  ;;  %s933_s19 = scalar_lea.hbm %s1222_s3, 128 }
  0x1d   : > { %v741_v9 = vld [vmem:[%s1076_s12] sm:$0xff]  ;;  %v742_v11 = vld [vmem:[%s1076_s12 + $0x8] sm:$0xff]  ;;  %v743_v20 = vld [vmem:[%s1076_s12 + $0x10] sm:$0xff]  ;;  %p930_p0 = scmp.ne.s32.totalorder %s928_s7, %s929_s9  ;;  %p934_p3 = scmp.lt.s32.totalorder %s928_s7, %s1222_s3 }
  0x1e   : > { %425 = vmatpush.msra.mxu1 %v420_v14  ;;  %815 = vmatpush.msra.mxu3 %v420_v14  ;;  %v413_v23 = vld [vmem:[%s1221_s2 + $0x30] sm:$0xff]  ;;  %v412_v24 = vld [vmem:[%s1221_s2 + $0x28] sm:$0xff]  ;;  %v411_v25 = vld [vmem:[%s1221_s2 + $0x20] sm:$0xff]  ;;  %p935_p4 = scmp.lt.s32.totalorder %s933_s19, %s929_s9 }
  0x1f   : > { %807 = vmatpush.bf16.msra.mxu2 %v754_v2  ;;  %360 = vmatpush.bf16.msra.mxu0 %v754_v2  ;;  %v410_v26 = vld [vmem:[%s1221_s2 + $0x18] sm:$0xff]  ;;  %v409_v27 = vld [vmem:[%s1221_s2 + $0x10] sm:$0xff]  ;;  %v408_v28 = vld [vmem:[%s1221_s2 + $0x8] sm:$0xff]  ;;  %p931_p1 = pnand %p930_p0, %p1049_p5 }
  0x20   : > { %426 = vmatpush.msra.mxu1 %v419_v15  ;;  %816 = vmatpush.msra.mxu3 %v419_v15  ;;  %v748_v29 = vld [vmem:[%s1076_s12 + $0x38] sm:$0xff]  ;;  %v407_v31 = vld [vmem:[%s1221_s2] sm:$0xff]  ;;  %p936_p7 = por %p935_p4, %p934_p3 }
  0x21   : > { %v744_v30 = vld [vmem:[%s1076_s12 + $0x18] sm:$0xff]  ;;  %s1137_s12 = scalar_lea.vmem [#allocation5], %s667_s22  ;;  %p932_p2 = pneg %p931_p1 }
  0x22   : > { %427 = vmatpush.msra.mxu1 %v418_v16  ;;  %817 = vmatpush.msra.mxu3 %v418_v16  ;;  %s555_s23 = sshll.u32 %s1137_s12, 4  ;;  %s556_s23 = int_to_ptr.vmem [resolvable:$true] %s555_s23 }
  0x23   : > { %808 = vmatpush.bf16.msra.mxu2 %v753_v3  ;;  %361 = vmatpush.bf16.msra.mxu0 %v753_v3  ;;  %p937_p8 = pnand %p936_p7, %p932_p2 }
  0x24   : > { %428 = vmatpush.msra.mxu1 %v417_v17  ;;  %818 = vmatpush.msra.mxu3 %v417_v17 }
  0x26   : > { %429 = vmatpush.msra.mxu1 %v416_v18  ;;  %819 = vmatpush.msra.mxu3 %v416_v18 }
  0x27   : > { %809 = vmatpush.bf16.msra.mxu2 %v752_v4  ;;  %362 = vmatpush.bf16.msra.mxu0 %v752_v4 }
  0x28   : > { %430 = vmatpush.msra.mxu1 %v415_v21  ;;  %820 = vmatpush.msra.mxu3 %v415_v21 }
  0x2a   : > { %431 = vmatpush.msra.mxu1 %v414_v22  ;;  %821 = vmatpush.msra.mxu3 %v414_v22 }
  0x2b   : > { %810 = vmatpush.bf16.msra.mxu2 %v751_v5  ;;  %363 = vmatpush.bf16.msra.mxu0 %v751_v5 }
  0x2c   : > { %432 = vmatpush.msra.mxu1 %v413_v23  ;;  %822 = vmatpush.msra.mxu3 %v413_v23 }
  0x2e   : > { %433 = vmatpush.msra.mxu1 %v412_v24  ;;  %823 = vmatpush.msra.mxu3 %v412_v24 }
  0x2f   : > { %811 = vmatpush.bf16.msra.mxu2 %v750_v6  ;;  %364 = vmatpush.bf16.msra.mxu0 %v750_v6 }
  0x30   : > { %434 = vmatpush.msra.mxu1 %v411_v25  ;;  %824 = vmatpush.msra.mxu3 %v411_v25 }
  0x32   : > { %435 = vmatpush.msra.mxu1 %v410_v26  ;;  %825 = vmatpush.msra.mxu3 %v410_v26 }
  0x33   : > { %812 = vmatpush.bf16.msra.mxu2 %v749_v7  ;;  %365 = vmatpush.bf16.msra.mxu0 %v749_v7 }
  0x34   : > { %436 = vmatpush.msra.mxu1 %v409_v27  ;;  %826 = vmatpush.msra.mxu3 %v409_v27 }
  0x36   : > { %386 = vmatmul.bf16.vlgmr.msra.gmra.mxu2 %v745_v8  ;;  %366 = vmatmul.bf16.vlgmr.msra.gmra.mxu0 %v741_v9 }
  0x37   : > { %437 = vmatpush.msra.mxu1 %v408_v28  ;;  %827 = vmatpush.msra.mxu3 %v408_v28 }
  0x39   : > { %438 = vmatpush.msra.mxu1 %v407_v31  ;;  %828 = vmatpush.msra.mxu3 %v407_v31 }
  0x46   : > { %391 = vmatmul.bf16.gmra.mxu2 %v746_v10  ;;  %371 = vmatmul.bf16.gmra.mxu0 %v742_v11 }
  0x56   : > { %396 = vmatmul.bf16.gmra.mxu2 %v747_v19  ;;  %376 = vmatmul.bf16.gmra.mxu0 %v743_v20 }
  0x66   : > { %401 = vmatmul.bf16.gmra.mxu2 %v748_v29  ;;  %381 = vmatmul.bf16.gmra.mxu0 %v744_v30 }
  0xb3   : > { %v367_v32 = vpop.f32.mrf.mxu0 }
  0xb4   : > { %439 = vmatmul.f32.vlgmr.msra.gmra.mxu1 %v367_v32 }
  0xb9   : > { %v387_v33 = vpop.f32.mrf.mxu2 }
  0xba   : > { %463 = vmatmul.f32.vlgmr.msra.gmra.mxu3 %v387_v33 }
  0xbb   : > { %v369_v34 = vpop.f32.mrf.mxu0 }
  0xbc   : > { %v761_v35 = vpack.c.bf16 %v369_v34, %v367_v32  ;;  %442 = vmatmul.f32.gmra.mxu1 %v369_v34 }
  0xbe   : > { %762 = vst [vmem:[%s1137_s12] sm:$0xff] %v761_v35  }
  0xc1   : > { %v389_v36 = vpop.f32.mrf.mxu2 }
  0xc2   : > { %v781_v37 = vpack.c.bf16 %v389_v36, %v387_v33  ;;  %466 = vmatmul.f32.gmra.mxu3 %v389_v36 }
  0xc3   : > { %v372_v38 = vpop.f32.mrf.mxu0 }
  0xc4   : > { %801 = vst [vmem:[%s1137_s12 + $0x20] sm:$0xff] %v781_v37   ;;  %445 = vmatmul.f32.gmra.mxu1 %v372_v38 }
  0xc9   : > { %v392_v39 = vpop.f32.mrf.mxu2 }
  0xca   : > { %469 = vmatmul.f32.gmra.mxu3 %v392_v39 }
  0xcb   : > { %v374_v40 = vpop.f32.mrf.mxu0 }
  0xcc   : > { %v766_v41 = vpack.c.bf16 %v374_v40, %v372_v38  ;;  %448 = vmatmul.f32.gmra.mxu1 %v374_v40 }
  0xce   : > { %798 = vst [vmem:[%s1137_s12 + $0x8] sm:$0xff] %v766_v41  }
  0xd1   : > { %v394_v42 = vpop.f32.mrf.mxu2 }
  0xd2   : > { %v786_v43 = vpack.c.bf16 %v394_v42, %v392_v39  ;;  %472 = vmatmul.f32.gmra.mxu3 %v394_v42 }
  0xd3   : > { %v377_v44 = vpop.f32.mrf.mxu0 }
  0xd4   : > { %802 = vst [vmem:[%s1137_s12 + $0x28] sm:$0xff] %v786_v43   ;;  %451 = vmatmul.f32.gmra.mxu1 %v377_v44 }
  0xd9   : > { %v397_v45 = vpop.f32.mrf.mxu2 }
  0xda   : > { %475 = vmatmul.f32.gmra.mxu3 %v397_v45 }
  0xdb   : > { %v379_v46 = vpop.f32.mrf.mxu0 }
  0xdc   : > { %v771_v47 = vpack.c.bf16 %v379_v46, %v377_v44  ;;  %454 = vmatmul.f32.gmra.mxu1 %v379_v46 }
  0xde   : > { %799 = vst [vmem:[%s1137_s12 + $0x10] sm:$0xff] %v771_v47  }
  0xe1   : > { %v399_v48 = vpop.f32.mrf.mxu2 }
  0xe2   : > { %v791_v49 = vpack.c.bf16 %v399_v48, %v397_v45  ;;  %478 = vmatmul.f32.gmra.mxu3 %v399_v48 }
  0xe3   : > { %v382_v50 = vpop.f32.mrf.mxu0 }
  0xe4   : > { %803 = vst [vmem:[%s1137_s12 + $0x30] sm:$0xff] %v791_v49   ;;  %457 = vmatmul.f32.gmra.mxu1 %v382_v50 }
  0xe9   : > { %v402_v51 = vpop.f32.mrf.mxu2 }
  0xea   : > { %481 = vmatmul.f32.gmra.mxu3 %v402_v51 }
  0xeb   : > { %v384_v52 = vpop.f32.mrf.mxu0 }
  0xec   : > { %v776_v53 = vpack.c.bf16 %v384_v52, %v382_v50  ;;  %460 = vmatmul.f32.gmra.mxu1 %v384_v52 }
  0xee   : > { %800 = vst [vmem:[%s1137_s12 + $0x18] sm:$0xff] %v776_v53  }
  0xf1   : > { %v404_v54 = vpop.f32.mrf.mxu2 }
  0xf2   : > { %v796_v55 = vpack.c.bf16 %v404_v54, %v402_v51  ;;  %484 = vmatmul.f32.gmra.mxu3 %v404_v54 }
  0xf4   : > { %804 = vst [vmem:[%s1137_s12 + $0x38] sm:$0xff] %v796_v55  }
  0xf5   : > { %940 = shalt.err (!%p937_p8)
}
  0xf6   : > { %s984_s20 = smov 64   ;;  %s985_s22 = smov 4   ;;  %vm488_vm0 = vcmask 7168  }
  0xf7   : > { %833 = dma.vmem_to_hbm [thread:$0]  (%p1049_p5), %s556_s23, 1024, %s558_s5, %s538_s6, %s984_s20, %s984_s20, %s985_s22  }
  0xf8   : > { %s671_s12 = sshll.u32 %s1231_s8, 3 }
  0xf9   : > { %s1168_s29 = scalar_lea.vmem %s1223_s4, %s671_s12 }
 0x131   : > { %v440_v56 = vpop.f32.mrf.mxu1 }
 0x132   : > { %489 = vst.msk [vmem:[%s1168_s29] sm:$0xff] %vm488_vm0, %v440_v56 }
 0x139   : > { %v443_v57 = vpop.f32.mrf.mxu1 }
 0x13a   : > { %490 = vst.msk [vmem:[%s1168_s29 + $0x8] sm:$0xff] %vm488_vm0, %v443_v57 }
 0x13d   : > { %v464_v58 = vpop.f32.mrf.mxu3 }
 0x13e   : > { %497 = vst.msk [vmem:[%s1168_s29 + $0x40] sm:$0xff] %vm488_vm0, %v464_v58 }
 0x141   : > { %v446_v59 = vpop.f32.mrf.mxu1 }
 0x142   : > { %491 = vst.msk [vmem:[%s1168_s29 + $0x10] sm:$0xff] %vm488_vm0, %v446_v59 }
 0x145   : > { %v467_v60 = vpop.f32.mrf.mxu3 }
 0x146   : > { %498 = vst.msk [vmem:[%s1168_s29 + $0x48] sm:$0xff] %vm488_vm0, %v467_v60 }
 0x149   : > { %v449_v61 = vpop.f32.mrf.mxu1 }
 0x14a   : > { %492 = vst.msk [vmem:[%s1168_s29 + $0x18] sm:$0xff] %vm488_vm0, %v449_v61 }
 0x14d   : > { %v470_v62 = vpop.f32.mrf.mxu3 }
 0x14e   : > { %499 = vst.msk [vmem:[%s1168_s29 + $0x50] sm:$0xff] %vm488_vm0, %v470_v62 }
 0x151   : > { %v452_v63 = vpop.f32.mrf.mxu1 }
 0x152   : > { %493 = vst.msk [vmem:[%s1168_s29 + $0x20] sm:$0xff] %vm488_vm0, %v452_v63 }
 0x155   : > { %v473_v0 = vpop.f32.mrf.mxu3 }
 0x156   : > { %500 = vst.msk [vmem:[%s1168_s29 + $0x58] sm:$0xff] %vm488_vm0, %v473_v0 }
 0x159   : > { %v455_v1 = vpop.f32.mrf.mxu1 }
 0x15a   : > { %494 = vst.msk [vmem:[%s1168_s29 + $0x28] sm:$0xff] %vm488_vm0, %v455_v1 }
 0x15d   : > { %v476_v2 = vpop.f32.mrf.mxu3 }
 0x15e   : > { %501 = vst.msk [vmem:[%s1168_s29 + $0x60] sm:$0xff] %vm488_vm0, %v476_v2 }
 0x161   : > { %v458_v3 = vpop.f32.mrf.mxu1 }
 0x162   : > { %495 = vst.msk [vmem:[%s1168_s29 + $0x30] sm:$0xff] %vm488_vm0, %v458_v3 }
 0x165   : > { %v479_v4 = vpop.f32.mrf.mxu3 }
 0x166   : > { %502 = vst.msk [vmem:[%s1168_s29 + $0x68] sm:$0xff] %vm488_vm0, %v479_v4 }
 0x169   : > { %v461_v5 = vpop.f32.mrf.mxu1 }
 0x16a   : > { %496 = vst.msk [vmem:[%s1168_s29 + $0x38] sm:$0xff] %vm488_vm0, %v461_v5 }
 0x16d   : > { %v482_v6 = vpop.f32.mrf.mxu3 }
 0x16e   : > { %503 = vst.msk [vmem:[%s1168_s29 + $0x70] sm:$0xff] %vm488_vm0, %v482_v6 }
 0x175   : > { %v485_v7 = vpop.f32.mrf.mxu3 }
 0x176   : > { %504 = vst.msk [vmem:[%s1168_s29 + $0x78] sm:$0xff] %vm488_vm0, %v485_v7 }
 0x177 PF: > { %p845_p5 = scmp.ge.s32.totalorder %s979_s18, 2  ;;  %s576_s25 = sand.u32 1, %s967_s15  }
 0x178   : > { %s577_s8 = scalar_lea.sflag [#allocation4], %s576_s25 }
 0x179   : > { %p840_p9 = pnand %p845_p5, %p1053_p6 }
 0x17b   : > { %p841_p10 = pneg %p840_p9 }
 0x17d   : > { %962 = dma.done.wait (%p841_p10), %s577_s8, 1024  }
 0x17e   : > { %964 = vsyncadd (%p841_p10), %s577_s8, 4294966272  ;;  %p16_p11 = scmp.ge.s32.totalorder %s1036_s21, 4   ;;  %s1226_s15 = smov %s971_s16 }
 0x17f   : > { %s1227_s16 = smov %s975_s17  ;;  %s1228_s17 = smov %s1047_s24 }
 0x180   : > { %s1229_s18 = smov %s1036_s21  ;;  %18 = sbr.rel (!%p16_p11) target bundleno = 4 (0x4), region = 84 }
 0x185   :  { %591 = vsyncpa [#allocation3], 1 }
 0x186   :  { %593 = vsyncpa [#allocation3 + $0x1], 1 }
 0x187   :  { %594 = vsyncpa [#allocation4], 1 }
 0x188   :  { %596 = vsyncpa [#allocation4 + $0x1], 1 }

</bundles_post_ra>
